<compile_context>
chip_gen: v7x
topology: tpu7x:2x2x1
jax: 0.10.0
libtpu: 0.0.40
codegen_flags: <defaults>
</compile_context>

<pallas_src>
import functools
import math

import jax
import jax.numpy as jnp
from jax.experimental import pallas as pl
from jax.experimental.pallas import tpu as pltpu


# ---------------------------------------------------------------------------
# Kernels
# ---------------------------------------------------------------------------

def kv_proj_kernel(y_ref, wk_ref, bk_ref, wv_ref, bv_ref, k_ref, v_ref):
    """Per-batch K/V projections (computed once per batch, not per q tile).

    Shapes seen by the kernel:
      y_ref        : (1, Lkv, d_cross)   compute dtype
      wk_ref/wv_ref: (d_cross, d_emb)    compute dtype
      bk_ref/bv_ref: (1, d_emb)          float32
      k_ref/v_ref  : (1, Lkv, d_emb)     compute dtype
    """
    y = y_ref[0]
    k = jnp.dot(y, wk_ref[...], preferred_element_type=jnp.float32) + bk_ref[...]
    v = jnp.dot(y, wv_ref[...], preferred_element_type=jnp.float32) + bv_ref[...]
    k_ref[0] = k.astype(k_ref.dtype)
    v_ref[0] = v.astype(v_ref.dtype)


def cross_attention_kernel(x_ref, k_ref, v_ref,
                           wq_ref, bq_ref, wo_ref, bo_ref,
                           o_ref,
                           *, n_heads: int, d_head: int,
                           compute_dtype, approx_recip: bool):
    """One (batch, query-tile) step of cross-attention.

    Shapes seen by the kernel:
      x_ref : (1, Tq, d_emb)            compute dtype
      k_ref : (1, H, Lkv, d_head)       compute dtype (head-major, pre-projected)
      v_ref : (1, H, Lkv, d_head)       compute dtype
      wq_ref: (d_emb, d_emb)            compute dtype (1/sqrt(d_head) folded in)
      wo_ref: (H, d_head, d_emb)        per-head view of the output projection
      bq_ref/bo_ref: (1, d_emb)         float32
      o_ref : (1, Tq, d_emb)
    """
    cdt = compute_dtype
    x = x_ref[0]                                              # (Tq, d_emb)

    # Lane-dense Q projection (attention scale already folded into wq/bq).
    q = jnp.dot(x, wq_ref[...], preferred_element_type=jnp.float32) + bq_ref[...]
    q = q.astype(cdt)

    # Head-major Q.  K/V already arrive head-major from the wrapper, so this
    # is the only in-kernel head split (H lane slices of one q tile).
    # TODO(synk): pltpu.einshape('q(hd)->hqd', ...) would fuse this relayout;
    # the slice+stack form is kept because it lowers on all current Mosaic
    # versions.
    q3 = jnp.stack(
        [q[:, h * d_head:(h + 1) * d_head] for h in range(n_heads)], axis=0)
    k3 = k_ref[0]                                             # (H, Lkv, Dh)
    v3 = v_ref[0]                                             # (H, Lkv, Dh)

    # Scores: head-batched dot_general contracting the last dims (no explicit
    # K transpose).  Softmax stays in f32; exp -> EUP, reductions -> XLU.
    s = jnp.einsum('hqd,hkd->hqk', q3, k3,
                   preferred_element_type=jnp.float32)        # (H, Tq, Lkv)
    s = s - jnp.max(s, axis=-1, keepdims=True)
    p = jnp.exp(s)
    p = p * pl.reciprocal(jnp.sum(p, axis=-1, keepdims=True), approx=approx_recip)

    # Weighted values: head-batched PV matmul.
    att = jnp.einsum('hqk,hkd->hqd', p.astype(cdt), v3,
                     preferred_element_type=jnp.float32)      # (H, Tq, Dh)
    att = att.astype(cdt)

    # Output projection: per-head (Tq,Dh) @ (Dh,d_emb) accumulated into ONE
    # (Tq, d_emb) f32 buffer -- no (H, Tq, d_emb) intermediate.  This equals
    # concat_heads(att) @ Wo.
    acc = jnp.dot(att[0], wo_ref[0], preferred_element_type=jnp.float32)
    for h in range(1, n_heads):
        acc = acc + jnp.dot(att[h], wo_ref[h],
                            preferred_element_type=jnp.float32)
    out = acc + bo_ref[...]                                   # (Tq, d_emb)

    o_ref[0] = out.astype(o_ref.dtype)


# ---------------------------------------------------------------------------
# Wrapper
# ---------------------------------------------------------------------------

def _round_up(n: int, m: int) -> int:
    return ((n + m - 1) // m) * m


def _vmem_capacity_bytes() -> int:
    try:
        return int(pltpu.get_tpu_info().vmem_capacity_bytes)
    except Exception:
        return 64 * 1024 * 1024          # conservative (v7x-sized) fallback


def _choose_q_tile(lq: int, cap: int):
    """Query tile (multiple of 8) and the padded sequence length."""
    cap = max(8, (cap // 8) * 8)
    tq = cap if lq >= cap else _round_up(lq, 8)
    return tq, _round_up(lq, tq)


def _vmem_limit_bytes(tq, lkv, d_emb, n_heads, cdt, out_dtype) -> int:
    """Budget from actual buffer sizes, capped at 3/4 of physical VMEM."""
    bpe = jnp.dtype(cdt).itemsize
    obe = jnp.dtype(out_dtype).itemsize
    blocks = 2 * tq * d_emb * bpe                       # x tile (double-buffered)
    blocks += 2 * 2 * lkv * d_emb * bpe                 # head-major K and V blocks
    blocks += 2 * 2 * d_emb * d_emb * bpe               # Wq, Wo (default buffering)
    blocks += 2 * 2 * d_emb * 4                         # biases (f32)
    blocks += 2 * tq * d_emb * obe                      # output tile
    temps = 4 * (3 * tq * d_emb + 2 * n_heads * tq * lkv)   # f32 intermediates
    cap = _vmem_capacity_bytes() * 3 // 4               # ~96 MiB v5e/v6e, ~48 MiB v7x
    return int(max(min(int((blocks + temps) * 1.5) + (8 << 20), cap), 32 << 20))


def cross_attention(x, y, params, *, n_heads: int,
                    q_tile: int | None = None,
                    compute_dtype=jnp.bfloat16,
                    out_dtype=None,
                    vmem_limit_bytes: int | None = None):
    """x: (B, Lq, d_emb), y: (B, Lkv, d_cross) -> (B, Lq, d_emb)."""
    B, Lq, d_emb = x.shape
    By, Lkv, d_cross = y.shape
    assert By == B and d_emb % n_heads == 0
    d_head = d_emb // n_heads
    cdt = compute_dtype
    out_dtype = x.dtype if out_dtype is None else out_dtype

    wq, bq, wk, bk, wv, bv, wo, bo = params

    # Fold the 1/sqrt(d_head) attention scale into the Q projection (free at
    # runtime, mathematically identical to scaling the score matrix).
    scale = 1.0 / math.sqrt(d_head)
    wq_s = (wq * scale).astype(cdt)
    bq_s = (bq * scale).astype(jnp.float32)
    wk_c, wv_c = wk.astype(cdt), wv.astype(cdt)
    bk_f, bv_f = bk.astype(jnp.float32), bv.astype(jnp.float32)
    wo_h = wo.reshape(n_heads, d_head, d_emb).astype(cdt)     # per-head Wo view
    bo_f = bo.astype(jnp.float32)
    x_c, y_c = x.astype(cdt), y.astype(cdt)

    # ---- K/V projection: once per batch, in a tiny dedicated kernel --------
    k_proj, v_proj = pl.pallas_call(
        kv_proj_kernel,
        out_shape=(jax.ShapeDtypeStruct((B, Lkv, d_emb), cdt),
                   jax.ShapeDtypeStruct((B, Lkv, d_emb), cdt)),
        grid_spec=pltpu.PrefetchScalarGridSpec(
            num_scalar_prefetch=0,
            grid=(B,),
            in_specs=[
                pl.BlockSpec((1, Lkv, d_cross), lambda b: (b, 0, 0)),
                pl.BlockSpec((d_cross, d_emb), lambda b: (0, 0)),
                pl.BlockSpec((1, d_emb), lambda b: (0, 0)),
                pl.BlockSpec((d_cross, d_emb), lambda b: (0, 0)),
                pl.BlockSpec((1, d_emb), lambda b: (0, 0)),
            ],
            out_specs=[pl.BlockSpec((1, Lkv, d_emb), lambda b: (b, 0, 0)),
                       pl.BlockSpec((1, Lkv, d_emb), lambda b: (b, 0, 0))],
        ),
        compiler_params=pltpu.CompilerParams(
            dimension_semantics=("parallel",)),
    )(y_c, wk_c, bk_f, wv_c, bv_f)

    # Head-major relayout of K/V in XLA (tiny: B*Lkv*d_emb elements) so the
    # attention kernel never splits K/V heads in-kernel.
    k_h = k_proj.reshape(B, Lkv, n_heads, d_head).transpose(0, 2, 1, 3)
    v_h = v_proj.reshape(B, Lkv, n_heads, d_head).transpose(0, 2, 1, 3)

    # ---- Query tiling (generation-aware cap) + padding for ragged Lq -------
    if q_tile is None:
        q_tile = 512 if _vmem_capacity_bytes() >= (100 << 20) else 256
    tq, lq_pad = _choose_q_tile(Lq, q_tile)
    n_q = lq_pad // tq
    if lq_pad != Lq:                       # query rows are independent: pad & slice
        x_c = jnp.pad(x_c, ((0, 0), (0, lq_pad - Lq), (0, 0)))

    if vmem_limit_bytes is None:
        vmem_limit_bytes = _vmem_limit_bytes(tq, Lkv, d_emb, n_heads, cdt, out_dtype)

    kernel = functools.partial(
        cross_attention_kernel,
        n_heads=n_heads, d_head=d_head, compute_dtype=cdt,
        # Exact reciprocal on the strict f32 validation path; approximate
        # (EUP) reciprocal otherwise.
        approx_recip=(jnp.dtype(cdt) != jnp.dtype(jnp.float32)))

    def _const_spec(a):
        nd = a.ndim
        # TODO(synk): pipeline_mode=pl.Buffered(1) would single-buffer these
        # grid-invariant blocks (halves weight VMEM, relevant on v7x); kept at
        # default buffering for lowering portability across jax versions.
        return pl.BlockSpec(a.shape, lambda b, qi: (0,) * nd)

    # Advisory cost estimate so XLA schedules surrounding ops sensibly.
    bpe = jnp.dtype(cdt).itemsize
    flops = 2 * B * lq_pad * d_emb * d_emb                      # Q projection
    flops += 2 * B * n_heads * lq_pad * Lkv * d_head * 2        # QK^T + PV
    flops += 2 * B * lq_pad * d_emb * d_emb                     # output projection
    bytes_accessed = (B * lq_pad * d_emb * bpe                  # x
                      + 2 * B * Lkv * d_emb * bpe               # K, V
                      + 2 * d_emb * d_emb * bpe + 2 * d_emb * 4 # weights + biases
                      + B * lq_pad * d_emb * jnp.dtype(out_dtype).itemsize)
    cost = pl.CostEstimate(flops=int(flops),
                           transcendentals=int(B * n_heads * lq_pad * Lkv),
                           bytes_accessed=int(bytes_accessed))

    out = pl.pallas_call(
        kernel,
        out_shape=jax.ShapeDtypeStruct((B, lq_pad, d_emb), out_dtype),
        grid_spec=pltpu.PrefetchScalarGridSpec(
            num_scalar_prefetch=0,
            # Both axes "parallel": on v7x either axis can be sharded across
            # the two TensorCores (B * n_q >= 2 keeps both fed).
            grid=(B, n_q),
            in_specs=[
                pl.BlockSpec((1, tq, d_emb), lambda b, qi: (b, qi, 0)),            # x
                pl.BlockSpec((1, n_heads, Lkv, d_head), lambda b, qi: (b, 0, 0, 0)),  # K
                pl.BlockSpec((1, n_heads, Lkv, d_head), lambda b, qi: (b, 0, 0, 0)),  # V
                _const_spec(wq_s), _const_spec(bq_s),
                _const_spec(wo_h), _const_spec(bo_f),
            ],
            out_specs=pl.BlockSpec((1, tq, d_emb), lambda b, qi: (b, qi, 0)),
        ),
        compiler_params=pltpu.CompilerParams(
            dimension_semantics=("parallel", "parallel"),
            vmem_limit_bytes=int(vmem_limit_bytes)),
        cost_estimate=cost,
    )(x_c, k_h, v_h, wq_s, bq_s, wo_h, bo_f)

    if lq_pad != Lq:
        out = out[:, :Lq]
    return out


# ---------------------------------------------------------------------------
# Pure-JAX reference & parameter construction
# ---------------------------------------------------------------------------

def cross_attention_ref(x, y, params, *, n_heads: int):
    """Pure-JAX reference matching the PyTorch module semantics."""
    B, Lq, d_emb = x.shape
    _, Lkv, _ = y.shape
    d_head = d_emb // n_heads
    wq, bq, wk, bk, wv, bv, wo, bo = params

    q = x @ wq + bq
    k = y @ wk + bk
    v = y @ wv + bv

    q = q.reshape(B, Lq, n_heads, d_head).transpose(0, 2, 1, 3)
    k = k.reshape(B, Lkv, n_heads, d_head).transpose(0, 2, 1, 3)
    v = v.reshape(B, Lkv, n_heads, d_head).transpose(0, 2, 1, 3)

    w = jnp.einsum("bhqd,bhkd->bhqk", q, k) / math.sqrt(d_head)
    w = jax.nn.softmax(w, axis=-1)
    att = jnp.einsum("bhqk,bhkd->bhqd", w, v)
    att = att.transpose(0, 2, 1, 3).reshape(B, Lq, d_emb)
    return att @ wo + bo


def make_params(key, d_emb, d_cross):
    ks = jax.random.split(key, 8)
    std = 0.02
    wq = std * jax.random.normal(ks[0], (d_emb, d_emb), jnp.float32)
    bq = std * jax.random.normal(ks[1], (1, d_emb), jnp.float32)
    wk = std * jax.random.normal(ks[2], (d_cross, d_emb), jnp.float32)
    bk = std * jax.random.normal(ks[3], (1, d_emb), jnp.float32)
    wv = std * jax.random.normal(ks[4], (d_cross, d_emb), jnp.float32)
    bv = std * jax.random.normal(ks[5], (1, d_emb), jnp.float32)
    wo = std * jax.random.normal(ks[6], (d_emb, d_emb), jnp.float32)
    bo = std * jax.random.normal(ks[7], (1, d_emb), jnp.float32)
    return (wq, bq, wk, bk, wv, bv, wo, bo)


if __name__ == "__main__":
    # Small, deterministic shapes.  d_emb = 128 keeps the output lane-dense.
    jax.config.update("jax_default_matmul_precision", "highest")

    B, Lq, Lkv = 2, 32, 16
    d_emb, d_cross, n_heads = 128, 64, 4

    key = jax.random.PRNGKey(0)
    kx, ky, kp, kx2 = jax.random.split(key, 4)
    x = jax.random.normal(kx, (B, Lq, d_emb), jnp.float32)
    y = jax.random.normal(ky, (B, Lkv, d_cross), jnp.float32)
    params = make_params(kp, d_emb, d_cross)

    ref = cross_attention_ref(x, y, params, n_heads=n_heads)

    # Full-precision matmul operands: tight check against the reference.
    out_f32 = jax.block_until_ready(
        cross_attention(x, y, params, n_heads=n_heads,
                        compute_dtype=jnp.float32))
    assert out_f32.shape == (B, Lq, d_emb)
    err_f32 = float(jnp.max(jnp.abs(out_f32 - ref)))
    assert err_f32 < 2e-3, f"f32 max err {err_f32}"

    # bf16 matmul operands + bf16 output (production configuration).
    out_bf16 = jax.block_until_ready(
        cross_attention(x, y, params, n_heads=n_heads,
                        compute_dtype=jnp.bfloat16, out_dtype=jnp.bfloat16))
    assert out_bf16.shape == (B, Lq, d_emb)
    err_bf16 = float(jnp.max(jnp.abs(out_bf16.astype(jnp.float32) - ref)))
    assert err_bf16 < 3e-2, f"bf16 max err {err_bf16}"

    # Ragged query length (exercises the query-padding path).
    Lq2 = 36
    x2 = jax.random.normal(kx2, (B, Lq2, d_emb), jnp.float32)
    ref2 = cross_attention_ref(x2, y, params, n_heads=n_heads)
    out2 = jax.block_until_ready(
        cross_attention(x2, y, params, n_heads=n_heads,
                        compute_dtype=jnp.float32))
    assert out2.shape == (B, Lq2, d_emb)
    err2 = float(jnp.max(jnp.abs(out2 - ref2)))
    assert err2 < 2e-3, f"ragged f32 max err {err2}"

    print("KERNEL_OK")
</pallas_src>

<mosaic_0001>
module attributes {stable_mosaic.version = 11 : i64} {
  func.func @kv_proj_kernel(%arg0: i32, %arg1: memref<1x16x64xf32, #tpu.memory_space<vmem>>, %arg2: memref<64x128xf32, #tpu.memory_space<vmem>>, %arg3: memref<1x128xf32, #tpu.memory_space<vmem>>, %arg4: memref<64x128xf32, #tpu.memory_space<vmem>>, %arg5: memref<1x128xf32, #tpu.memory_space<vmem>>, %arg6: memref<1x16x128xf32, #tpu.memory_space<vmem>>, %arg7: memref<1x16x128xf32, #tpu.memory_space<vmem>>) attributes {dimension_semantics = [#tpu.dimension_semantics<parallel>], iteration_bounds = array<i64: 2>, scalar_prefetch = 0 : i64, scratch_operands = 0 : i64, tpu.core_type = #tpu.core_type<tc>, window_params = [{transform_indices = @transform_0, window_bounds = array<i64: 1, 16, 64>}, {pipeline_mode = #tpu.pipeline_mode<synchronous>, transform_indices = @transform_1, window_bounds = array<i64: 64, 128>}, {pipeline_mode = #tpu.pipeline_mode<synchronous>, transform_indices = @transform_2, window_bounds = array<i64: 1, 128>}, {pipeline_mode = #tpu.pipeline_mode<synchronous>, transform_indices = @transform_3, window_bounds = array<i64: 64, 128>}, {pipeline_mode = #tpu.pipeline_mode<synchronous>, transform_indices = @transform_4, window_bounds = array<i64: 1, 128>}, {transform_indices = @transform_5, window_bounds = array<i64: 1, 16, 128>}, {transform_indices = @transform_6, window_bounds = array<i64: 1, 16, 128>}]} {
    %c0 = arith.constant 0 : index
    %c0_0 = arith.constant 0 : index
    %c0_1 = arith.constant 0 : index
    %0 = vector.load %arg1[%c0, %c0_0, %c0_1] : memref<1x16x64xf32, #tpu.memory_space<vmem>>, vector<1x16x64xf32>
    %1 = vector.shape_cast %0 : vector<1x16x64xf32> to vector<16x64xf32>
    %c0_2 = arith.constant 0 : index
    %c0_3 = arith.constant 0 : index
    %2 = vector.load %arg2[%c0_2, %c0_3] : memref<64x128xf32, #tpu.memory_space<vmem>>, vector<64x128xf32>
    %cst = arith.constant dense<0.000000e+00> : vector<16x128xf32>
    %3 = tpu.matmul %1, %2, %cst {dimension_numbers = #tpu.dot_dimension_numbers<[1], [0], [0], [1], [0, 0, 1, 1], [], []>, precision = #tpu.contract_precision<fp32>} : vector<16x64xf32>, vector<64x128xf32>, vector<16x128xf32> -> vector<16x128xf32>
    %c0_4 = arith.constant 0 : index
    %c0_5 = arith.constant 0 : index
    %4 = vector.load %arg3[%c0_4, %c0_5] : memref<1x128xf32, #tpu.memory_space<vmem>>, vector<1x128xf32>
    %5 = vector.broadcast %4 : vector<1x128xf32> to vector<16x128xf32>
    %6 = arith.addf %3, %5 : vector<16x128xf32>
    %c0_6 = arith.constant 0 : index
    %c0_7 = arith.constant 0 : index
    %7 = vector.load %arg4[%c0_6, %c0_7] : memref<64x128xf32, #tpu.memory_space<vmem>>, vector<64x128xf32>
    %cst_8 = arith.constant dense<0.000000e+00> : vector<16x128xf32>
    %8 = tpu.matmul %1, %7, %cst_8 {dimension_numbers = #tpu.dot_dimension_numbers<[1], [0], [0], [1], [0, 0, 1, 1], [], []>, precision = #tpu.contract_precision<fp32>} : vector<16x64xf32>, vector<64x128xf32>, vector<16x128xf32> -> vector<16x128xf32>
    %c0_9 = arith.constant 0 : index
    %c0_10 = arith.constant 0 : index
    %9 = vector.load %arg5[%c0_9, %c0_10] : memref<1x128xf32, #tpu.memory_space<vmem>>, vector<1x128xf32>
    %10 = vector.broadcast %9 : vector<1x128xf32> to vector<16x128xf32>
    %11 = arith.addf %8, %10 : vector<16x128xf32>
    %c0_11 = arith.constant 0 : index
    %c0_12 = arith.constant 0 : index
    %c0_13 = arith.constant 0 : index
    %12 = vector.load %arg6[%c0_11, %c0_12, %c0_13] : memref<1x16x128xf32, #tpu.memory_space<vmem>>, vector<1x16x128xf32>
    %13 = vector.shape_cast %12 : vector<1x16x128xf32> to vector<16x128xf32>
    %14 = vector.shape_cast %6 : vector<16x128xf32> to vector<1x16x128xf32>
    tpu.vector_store %arg6[%c0_11, %c0_12, %c0_13], %14 {strides = array<i32>} : memref<1x16x128xf32, #tpu.memory_space<vmem>>, vector<1x16x128xf32>,
    %c0_14 = arith.constant 0 : index
    %c0_15 = arith.constant 0 : index
    %c0_16 = arith.constant 0 : index
    %15 = vector.load %arg7[%c0_14, %c0_15, %c0_16] : memref<1x16x128xf32, #tpu.memory_space<vmem>>, vector<1x16x128xf32>
    %16 = vector.shape_cast %15 : vector<1x16x128xf32> to vector<16x128xf32>
    %17 = vector.shape_cast %11 : vector<16x128xf32> to vector<1x16x128xf32>
    tpu.vector_store %arg7[%c0_14, %c0_15, %c0_16], %17 {strides = array<i32>} : memref<1x16x128xf32, #tpu.memory_space<vmem>>, vector<1x16x128xf32>,
    return
  }
  func.func @transform_0(%arg0: i32) -> (i32, i32, i32) {
    %c0_i32 = arith.constant 0 : i32
    %c0_i32_0 = arith.constant 0 : i32
    %c0_i32_1 = arith.constant 0 : i32
    return %arg0, %c0_i32, %c0_i32_0 : i32, i32, i32
  }
  func.func @transform_1(%arg0: i32) -> (i32, i32) {
    %c0_i32 = arith.constant 0 : i32
    %c0_i32_0 = arith.constant 0 : i32
    %c0_i32_1 = arith.constant 0 : i32
    return %c0_i32, %c0_i32_0 : i32, i32
  }
  func.func @transform_2(%arg0: i32) -> (i32, i32) {
    %c0_i32 = arith.constant 0 : i32
    %c0_i32_0 = arith.constant 0 : i32
    %c0_i32_1 = arith.constant 0 : i32
    return %c0_i32, %c0_i32_0 : i32, i32
  }
  func.func @transform_3(%arg0: i32) -> (i32, i32) {
    %c0_i32 = arith.constant 0 : i32
    %c0_i32_0 = arith.constant 0 : i32
    %c0_i32_1 = arith.constant 0 : i32
    return %c0_i32, %c0_i32_0 : i32, i32
  }
  func.func @transform_4(%arg0: i32) -> (i32, i32) {
    %c0_i32 = arith.constant 0 : i32
    %c0_i32_0 = arith.constant 0 : i32
    %c0_i32_1 = arith.constant 0 : i32
    return %c0_i32, %c0_i32_0 : i32, i32
  }
  func.func @transform_5(%arg0: i32) -> (i32, i32, i32) {
    %c0_i32 = arith.constant 0 : i32
    %c0_i32_0 = arith.constant 0 : i32
    %c0_i32_1 = arith.constant 0 : i32
    return %arg0, %c0_i32, %c0_i32_0 : i32, i32, i32
  }
  func.func @transform_6(%arg0: i32) -> (i32, i32, i32) {
    %c0_i32 = arith.constant 0 : i32
    %c0_i32_0 = arith.constant 0 : i32
    %c0_i32_1 = arith.constant 0 : i32
    return %arg0, %c0_i32, %c0_i32_0 : i32, i32, i32
  }
}

</mosaic_0001>

<bundles_post_ra>
// kernel: tpu_custom_call.1
= control target key start
LH: loop header
LB: loop body
LE: loop exit
PB: predicated region body
PF: predicated region fallthrough
CT: control target
= control target key end

     0   :  { %12 = vsyncpa [#allocation3], 0  ;;  %s3203_s0 = inlined_call_operand.hbm [shape: f32[2,16,64], index: 0, kind: input, shape index: {}]   ;;  %s3204_s1 = inlined_call_operand.hbm [shape: f32[64,128], index: 1, kind: input, shape index: {}]   ;;  %s3205_s2 = inlined_call_operand.vmem [shape: f32[1,128], index: 2, kind: input, shape index: {}]   ;;  %s3206_s3 = inlined_call_operand.hbm [shape: f32[64,128], index: 3, kind: input, shape index: {}]   ;;  %s3207_s4 = inlined_call_operand.vmem [shape: f32[1,128], index: 4, kind: input, shape index: {}]   ;;  %s3208_s5 = inlined_call_operand.hbm [shape: f32[2,16,128], index: 5, kind: output, shape index: {0}]   ;;  %s3209_s6 = inlined_call_operand.hbm [shape: f32[2,16,128], index: 6, kind: output, shape index: {1}]  }
   0x1   :  { %14 = vsyncpa [#allocation3 + $0x1], 0 }
   0x2   :  { %15 = vsyncpa [#allocation6], 0 }
   0x3   :  { %16 = vsyncpa [#allocation4], 0 }
   0x4   :  { %18 = vsyncpa [#allocation4 + $0x1], 0 }
   0x5   :  { %19 = vsyncpa [#allocation10], 0 }
   0x6   :  { %21 = vsyncpa [#allocation10 + $0x1], 0  ;;  %s2573_s21 = smov 0   ;;  %s2575_s22 = smov 0  }
   0x7   :  { %s2577_s23 = smov 0   ;;  %s2579_s24 = smov 0  }
   0x8 LB: > { %s2594_s25 = sadd.s32 4294967295, %s2527_s24   ;;  %s1672_s26 = sadd.s32 4294967294, %s2527_s24   ;;  %s2527_s24 = sphi %s2579_s24, %s3229_s24   ;;  %s2523_s23 = sphi %s2577_s23, %s3228_s23   ;;  %s2519_s22 = sphi %s2575_s22, %s3227_s22   ;;  %s2515_s21 = sphi %s2573_s21, %s3226_s21  }
   0x9   : > { %p47_p0 = scmp.ne.s32.totalorder %s2519_s22, %s2515_s21  ;;  %p3210_p1 = scmp.eq.s32.totalorder %s2594_s25, 0 }
   0xa   : > { %p161_p3 = scmp.eq.s32.totalorder %s1672_s26, 1  ;;  %p1673_p5 = scmp.ge.s32.totalorder %s2527_s24, 1 }
   0xb   : > { %p2603_p4 = por %p3210_p1, %p47_p0  ;;  %p194_p7 = scmp.lt.s32.totalorder %s2527_s24, 3 }
   0xc   : > { %p2608_p6 = por %p161_p3, %p47_p0  ;;  %s2529_s30 = smov [#allocation5]  }
   0xd   : > { %s3213_s27 = scalar_select %p2603_p4, 1, 0 }
   0xe   : > { %s3214_s28 = scalar_select %p2608_p6, 1, 0 }
   0xf   : > { %p2613_p8 = pnand %p1673_p5, %p194_p7  ;;  %s206_s7 = sshll.u32 %s2529_s30, 4  ;;  %s2617_s7 = int_to_ptr.vmem [resolvable:$true] %s206_s7 }
  0x10   : > { %s2530_s9 = smov [#allocation7]   ;;  %s2339_s13 = scalar_lea.hbm %s3204_s1, 1024 }
  0x11   : > { %p2277_p9 = pneg %p2613_p8  ;;  %s222_s10 = sshll.u32 %s2530_s9, 4  ;;  %s2628_s10 = int_to_ptr.vmem [resolvable:$true] %s222_s10 }
  0x12   : > { %p2340_p12 = scmp.ne.s32.totalorder %s3204_s1, %s2339_s13  ;;  %p2346_p5 = scmp.lt.u32.totalorder %s2339_s13, %s3204_s1 }
  0x13   : > { %p2624_p11 = pnand %p2277_p9, %p3210_p1 }
  0x15   : > { %p2341_p13 = pneg %p2624_p11 }
  0x17   : > { %p2342_p0 = pnand %p2341_p13, %p2340_p12 }
  0x19   : > { %p2343_p3 = pneg %p2342_p0 }
  0x1b   : > { %p2348_p7 = pnand %p2346_p5, %p2343_p3 }
  0x1d   : > { %2351 = shalt.err (!%p2348_p7)
}
  0x1e   : > { %s2352_s18 = scalar_lea.vmem %s2617_s7, 1024  ;;  %p2360_p2 = scmp.lt.s32.totalorder %s2617_s7, %s2617_s7 }
  0x1f   : > { %p2353_p9 = scmp.ne.s32.totalorder %s2617_s7, %s2352_s18  ;;  %p2361_p12 = scmp.lt.s32.totalorder %s2352_s18, %s2352_s18 }
  0x21   : > { %p2355_p10 = pnand %p2353_p9, %p2341_p13  ;;  %p2362_p0 = por %p2361_p12, %p2360_p2 }
  0x23   : > { %p2356_p1 = pneg %p2355_p10 }
  0x25   : > { %p2363_p6 = pnand %p2362_p0, %p2356_p1 }
  0x27   : > { %2366 = shalt.err (!%p2363_p6)
}
  0x28   : > { %s2531_s19 = smov 128   ;;  %s2532_s20 = smov 8  }
  0x29   : > { %2280 = dma.hbm_to_vmem [thread:$0]  (!%p2624_p11), %s3204_s1, 1024, %s2617_s7, [#allocation6], %s2531_s19, %s2531_s19, %s2532_s20  }
  0x2a   : > { %s2367_s12 = scalar_lea.hbm %s3206_s3, 1024 }
  0x2b   : > { %p2368_p1 = scmp.ne.s32.totalorder %s3206_s3, %s2367_s12  ;;  %p2374_p10 = scmp.lt.u32.totalorder %s2367_s12, %s3206_s3 }
  0x2d   : > { %p2370_p2 = pnand %p2368_p1, %p2341_p13 }
  0x2f   : > { %p2371_p6 = pneg %p2370_p2 }
  0x31   : > { %p2376_p3 = pnand %p2374_p10, %p2371_p6 }
  0x33   : > { %2379 = shalt.err (!%p2376_p3)
}
  0x34   : > { %s2380_s7 = scalar_lea.vmem %s2628_s10, 1024  ;;  %p2388_p12 = scmp.lt.s32.totalorder %s2628_s10, %s2628_s10 }
  0x35   : > { %p2381_p5 = scmp.ne.s32.totalorder %s2628_s10, %s2380_s7  ;;  %p2389_p0 = scmp.lt.s32.totalorder %s2380_s7, %s2380_s7 }
  0x37   : > { %p2383_p7 = pnand %p2381_p5, %p2341_p13  ;;  %p2390_p1 = por %p2389_p0, %p2388_p12 }
  0x39   : > { %p2384_p9 = pneg %p2383_p7 }
  0x3b   : > { %p2391_p2 = pnand %p2390_p1, %p2384_p9 }
  0x3d   : > { %2394 = shalt.err (!%p2391_p2)
}
  0x3e   : > { %2283 = dma.hbm_to_vmem [thread:$0]  (!%p2624_p11), %s3206_s3, 1024, %s2628_s10, [#allocation6], %s2531_s19, %s2531_s19, %s2532_s20  }
  0x3f   : > { %s2689_s8 = sadd.s32 1, %s2527_s24   ;;  %s34_s26 = sadd.s32 1, %s2523_s23 }
  0x40   : > { %s31_s30 = ssub.s32 %s2527_s24, %s2689_s8  ;;  %p41_p13 = scmp.ne.s32.totalorder %s2523_s23, %s2519_s22 }
  0x41   : > { %p32_p6 = scmp.eq.s32.totalorder %s31_s30, 0  ;;  %p42_p10 = scmp.eq.s32.totalorder %s2527_s24, 0 }
  0x42   : > { %p3217_p3 = scmp.eq.s32.totalorder %s2594_s25, 1  ;;  %p2297_p7 = scmp.lt.s32.totalorder %s2527_s24, 2 }
  0x43   : > { %s2705_s11 = scalar_select %p32_p6, %s2523_s23, %s34_s26  }
  0x44   : > { %p2699_p5 = por %p3217_p3, %p41_p13  ;;  %p43_p9 = por %p42_p10, %p41_p13 }
  0x45   : > { %s239_s12 = sand.u32 1, %s2523_s23   ;;  %s1696_s10 = sshll.u32 %s2527_s24, 8 }
  0x46   : > { %s3218_s9 = scalar_select %p2699_p5, 1, 0 }
  0x47   : > { %s1677_s13 = sshll.u32 %s239_s12, 4  ;;  %s2712_s16 = scalar_lea.hbm %s3203_s0, %s1696_s10 }
  0x48   : > { %s243_s7 = scalar_lea.vmem [#allocation2], %s1677_s13  ;;  %p2716_p11 = pnand %p2297_p7, %p43_p9 }
  0x49   : > { %s250_s17 = sshll.u32 %s243_s7, 4  ;;  %s2720_s26 = scalar_lea.sflag [#allocation3], %s239_s12  ;;  %s2714_s17 = int_to_ptr.vmem [resolvable:$true] %s250_s17 }
  0x4a   : > { %s2395_s30 = scalar_lea.hbm %s2712_s16, 256  ;;  %p2397_p0 = pneg %p2716_p11 }
  0x4b   : > { %p2396_p12 = scmp.ne.s32.totalorder %s2712_s16, %s2395_s30  ;;  %s2400_s14 = scalar_lea.hbm %s3203_s0, 512 }
  0x4c   : > { %p2401_p13 = scmp.lt.u32.totalorder %s2712_s16, %s3203_s0  ;;  %p2402_p6 = scmp.lt.u32.totalorder %s2400_s14, %s2395_s30 }
  0x4d   : > { %p2398_p1 = pnand %p2397_p0, %p2396_p12  ;;  %p2404_p3 = scmp.lt.u32.totalorder %s2395_s30, %s2712_s16 }
  0x4e   : > { %p2403_p10 = por %p2402_p6, %p2401_p13 }
  0x4f   : > { %p2399_p2 = pneg %p2398_p1 }
  0x50   : > { %p2405_p7 = por %p2404_p3, %p2403_p10 }
  0x52   : > { %p2406_p9 = pnand %p2405_p7, %p2399_p2 }
  0x54   : > { %2409 = shalt.err (!%p2406_p9)
}
  0x55   : > { %s2410_s12 = scalar_lea.vmem %s2714_s17, 256  ;;  %s2533_s13 = smov [#allocation2]  }
  0x56   : > { %p2411_p12 = scmp.ne.s32.totalorder %s2714_s17, %s2410_s12  ;;  %s2415_s10 = sshll.u32 %s2533_s13, 4  ;;  %s2416_s10 = int_to_ptr.vmem [resolvable:$false] %s2415_s10 }
  0x57   : > { %s2417_s15 = scalar_lea.vmem %s2416_s10, 512  ;;  %p2418_p4 = scmp.lt.s32.totalorder %s2714_s17, %s2416_s10 }
  0x58   : > { %p2413_p1 = pnand %p2411_p12, %p2397_p0  ;;  %p2419_p13 = scmp.lt.s32.totalorder %s2417_s15, %s2410_s12 }
  0x5a   : > { %p2414_p5 = pneg %p2413_p1  ;;  %p2420_p6 = por %p2419_p13, %p2418_p4 }
  0x5c   : > { %p2421_p10 = pnand %p2420_p6, %p2414_p5 }
  0x5e   : > { %2424 = shalt.err (!%p2421_p10)
}
  0x5f   : > { %2287 = dma.hbm_to_vmem [thread:$0]  (!%p2716_p11), %s2712_s16, 256, %s2714_s17, %s2720_s26, %s2531_s19, %s2531_s19, %s2532_s20  }
  0x60   : > { %262 = sbr.rel (%p2613_p8) target bundleno = 463 (0x1cf), region = 40  ;;  %s2754_s30 = sand.u32 (!%p2613_p8), 1, %s2519_s22  }
  0x61   : > { %s2757_s14 = sshll.u32 (!%p2613_p8), %s2754_s30, 4  ;;  %s265_s18 = scalar_lea.sflag (!%p2613_p8), [#allocation3], %s2754_s30 }
  0x62   : > { %s268_s7 = scalar_lea.vmem (!%p2613_p8), [#allocation2], %s2757_s14  ;;  %p3220_p4 = scmp.ne.s32.totalorder (!%p2613_p8), %s3213_s27, 0 }
  0x67   : > { %2498 = dma.done.wait (%p3220_p4), %s265_s18, 256  }
  0x68   : > { %2500 = vsyncadd (%p3220_p4), %s265_s18, 4294967040  ;;  %p3221_p5 = scmp.eq.s32.totalorder %s2594_s25, 0 }
  0x6a   : > { %2502 = dma.done.wait (%p3221_p5), [#allocation6], 2048   ;;  %p3222_p8 = pmov %p3221_p5 }
  0x6b   : > { %v312_v0 = vld [vmem:[#allocation5] sm:$0xff]  ;;  %v313_v1 = vld [vmem:[#allocation5 + $0x8] sm:$0xff]  ;;  %vm327_vm0 = vcmask 523264   ;;  %v314_v7 = vld [vmem:[#allocation5 + $0x10] sm:$0xff]  ;;  %s302_s27 = scalar_lea.vmem [#allocation8], %s2757_s14  ;;  %s1697_s16 = sshll.u32 %s2594_s25, 8 }
  0x6c   : > { %2504 = vsyncadd (%p3222_p8), [#allocation6], 4294965248  ;;  %v914_v2 = vld [vmem:[#allocation7] sm:$0xff]  ;;  %v335_v3 = vand.u32 4294901760, %v312_v0  ;;  %v338_v4 = vand.u32 4294901760, %v313_v1  ;;  %v915_v5 = vld [vmem:[#allocation7 + $0x8] sm:$0xff]  ;;  %s3120_s15 = scalar_lea.hbm %s3208_s5, %s1697_s16 }
  0x6d   : > { %v930_v6 = vand.u32 4294901760, %v914_v2  ;;  %v315_v8 = vld [vmem:[#allocation5 + $0x18] sm:$0xff]  ;;  %v933_v9 = vand.u32 4294901760, %v915_v5  ;;  %v341_v10 = vand.u32 4294901760, %v314_v7  ;;  %v2769_v12 = vld [vmem:[#allocation7 + $0x10] sm:$0xff]  ;;  %v2773_v14 = vld [vmem:[#allocation5 + $0x20] sm:$0xff] }
  0x6e   : > { %v344_v11 = vand.u32 4294901760, %v315_v8  ;;  %v2771_v13 = vld [vmem:[#allocation7 + $0x18] sm:$0xff]  ;;  %v2775_v15 = vpack.c.bf16 %v338_v4, %v335_v3  ;;  %v936_v16 = vand.u32 4294901760, %v2769_v12  ;;  %v2779_v18 = vld [vmem:[#allocation5 + $0x28] sm:$0xff]  ;;  %v347_v19 = vand.u32 4294901760, %v2773_v14  ;;  %v2782_v20 = vld [vmem:[#allocation7 + $0x20] sm:$0xff] }
  0x6f   : > { %v939_v17 = vand.u32 4294901760, %v2771_v13  ;;  %v2784_v21 = vld [vmem:[#allocation7 + $0x28] sm:$0xff]  ;;  %v2786_v22 = vpack.c.bf16 %v933_v9, %v930_v6  ;;  %v350_v24 = vand.u32 4294901760, %v2779_v18  ;;  %v942_v25 = vand.u32 4294901760, %v2782_v20  ;;  %v2792_v26 = vld [vmem:[#allocation5 + $0x30] sm:$0xff]  ;;  %v2794_v27 = vld [vmem:[#allocation5 + $0x38] sm:$0xff] }
  0x70   : > { %v2788_v23 = vpack.c.bf16 %v344_v11, %v341_v10  ;;  %v2796_v28 = vld [vmem:[#allocation7 + $0x30] sm:$0xff]  ;;  %2048 = vmatprep.subr.bf16.mxu0 %v2775_v15  ;;  %v945_v30 = vand.u32 4294901760, %v2784_v21  ;;  %v353_v31 = vand.u32 4294901760, %v2792_v26  ;;  %v356_v32 = vand.u32 4294901760, %v2794_v27  ;;  %v2808_v33 = vld [vmem:[#allocation7 + $0x38] sm:$0xff]  ;;  %s1532_s29 = sshll.u32 %s302_s27, 4  ;;  %s3108_s29 = int_to_ptr.vmem [resolvable:$true] %s1532_s29 }
  0x71   : > { %v2803_v29 = vpack.c.bf16 %v939_v17, %v936_v16  ;;  %v310_v34 = vld [vmem:[%s268_s7] sm:$0xff]  ;;  %v311_v35 = vld [vmem:[%s268_s7 + $0x8] sm:$0xff]  ;;  %2144 = vmatprep.subr.bf16.mxu1 %v2786_v22  ;;  %2050 = vmatpush3.bf16.msra.mxu0 %v2775_v15  ;;  %v2820_v36 = vpack.c.bf16 %v350_v24, %v347_v19  ;;  %v948_v37 = vand.u32 4294901760, %v2796_v28  ;;  %v951_v38 = vand.u32 4294901760, %v2808_v33  ;;  %s3114_s12 = scalar_lea.vmem [#allocation9], %s2757_s14  ;;  %s3127_s7 = scalar_lea.hbm %s3209_s6, %s1697_s16 }
  0x72   : > { %v329_v39 = vsel %vm327_vm0, %v310_v34, 0  ;;  %2146 = vmatpush3.bf16.msra.mxu1 %v2786_v22  ;;  %2052 = vmatprep.subr.bf16.mxu0 %v2788_v23  ;;  %v2831_v40 = vpack.c.bf16 %v945_v30, %v942_v25  ;;  %v2837_v41 = vpack.c.bf16 %v356_v32, %v353_v31  ;;  %v332_v42 = vsel %vm327_vm0, %v311_v35, 0  ;;  %s1548_s13 = sshll.u32 %s3114_s12, 4  ;;  %s1514_s19 = scalar_lea.sflag [#allocation4], %s2754_s30  ;;  %s3122_s13 = int_to_ptr.vmem [resolvable:$true] %s1548_s13 }
  0x73   : > { %v2840_v43 = vand.u32 4294901760, %v329_v39  ;;  %2148 = vmatprep.subr.bf16.mxu1 %v2803_v29  ;;  %v2847_v44 = vpack.c.bf16 %v951_v38, %v948_v37  ;;  %v2849_v45 = vand.u32 4294901760, %v332_v42  ;;  %v2851_v46 = vsub.f32 %v312_v0, %v335_v3  ;;  %s2425_s20 = scalar_lea.vmem %s3108_s29, 256  ;;  %p3223_p0 = scmp.ne.s32.totalorder %s3218_s9, 0 }
  0x74   : > { %v2853_v47 = vsub.f32 %v313_v1, %v338_v4  ;;  %v2858_v49 = vsub.f32 %v914_v2, %v930_v6  ;;  %v2860_v50 = vsub.f32 %v915_v5, %v933_v9  ;;  %v2862_v51 = vsub.f32 %v314_v7, %v341_v10  ;;  %p2426_p11 = scmp.ne.s32.totalorder %s3108_s29, %s2425_s20  ;;  %s2534_s17 = smov [#allocation8]  }
  0x75   : > { %v2856_v48 = vsub.f32 %v329_v39, %v2840_v43  ;;  %2054 = vmatpush3.bf16.msra.mxu0 %v2788_v23  ;;  %v430_v52 = vand.u32 4294901760, %v2851_v46  ;;  %v2868_v54 = vsub.f32 %v332_v42, %v2849_v45  ;;  %v2870_v55 = vsub.f32 %v315_v8, %v344_v11  ;;  %s2429_s26 = sshll.u32 %s2534_s17, 4  ;;  %s2430_s26 = int_to_ptr.vmem [resolvable:$false] %s2429_s26 }
  0x76   : > { %v437_v53 = vand.u32 4294901760, %v2853_v47  ;;  %2150 = vmatpush3.bf16.msra.mxu1 %v2803_v29  ;;  %2056 = vmatprep.subr.bf16.mxu0 %v2820_v36  ;;  %v1025_v57 = vand.u32 4294901760, %v2858_v49  ;;  %v1032_v58 = vand.u32 4294901760, %v2860_v50  ;;  %v444_v59 = vand.u32 4294901760, %v2862_v51  ;;  %p2427_p2 = pnand %p2426_p11, %p3223_p0  ;;  %s2431_s10 = scalar_lea.vmem %s2430_s26, 512 }
  0x77   : > { %v2875_v56 = vand.u32 4294901760, %v2856_v48  ;;  %2152 = vmatprep.subr.bf16.mxu1 %v2831_v40  ;;  %v431_v60 = vsub.f32 %v2851_v46, %v430_v52  ;;  %v2888_v62 = vand.u32 4294901760, %v2868_v54  ;;  %v451_v63 = vand.u32 4294901760, %v2870_v55  ;;  %p2432_p7 = scmp.lt.s32.totalorder %s3108_s29, %s2430_s26  ;;  %p2433_p9 = scmp.lt.s32.totalorder %s2431_s10, %s2425_s20 }
  0x78   : > { %v438_v61 = vsub.f32 %v2853_v47, %v437_v53  ;;  %v1026_v1 = vsub.f32 %v2858_v49, %v1025_v57  ;;  %v1033_v2 = vsub.f32 %v2860_v50, %v1032_v58  ;;  %v445_v3 = vsub.f32 %v2862_v51, %v444_v59  ;;  %p2428_p3 = pneg %p2427_p2 }
  0x79   : > { %v410_v0 = vsub.f32 %v2856_v48, %v2875_v56  ;;  %2058 = vmatpush3.bf16.msra.mxu0 %v2820_v36  ;;  %v432_v4 = vand.u32 4294901760, %v431_v60  ;;  %v420_v6 = vsub.f32 %v2868_v54, %v2888_v62  ;;  %v452_v7 = vsub.f32 %v2870_v55, %v451_v63  ;;  %p2434_p12 = por %p2433_p9, %p2432_p7 }
  0x7a   : > { %v439_v5 = vand.u32 4294901760, %v438_v61  ;;  %2154 = vmatpush3.bf16.msra.mxu1 %v2831_v40  ;;  %2060 = vmatprep.subr.bf16.mxu0 %v2837_v41  ;;  %v1027_v9 = vand.u32 4294901760, %v1026_v1  ;;  %v1034_v10 = vand.u32 4294901760, %v1033_v2  ;;  %v446_v11 = vand.u32 4294901760, %v445_v3 }
  0x7b   : > { %v411_v8 = vand.u32 4294901760, %v410_v0  ;;  %2156 = vmatprep.subr.bf16.mxu1 %v2847_v44  ;;  %v453_v35 = vand.u32 4294901760, %v452_v7  ;;  %v2914_v39 = vsub.f32 %v2769_v12, %v936_v16  ;;  %v421_v60 = vand.u32 4294901760, %v420_v6  ;;  %p2435_p1 = pnand %p2434_p12, %p2428_p3 }
  0x7c   : > { %v2063_v34 = vpack.c.bf16 %v439_v5, %v432_v4  ;;  %v2159_v42 = vpack.c.bf16 %v1034_v10, %v1027_v9  ;;  %v2919_v61 = vsub.f32 %v2771_v13, %v939_v17  ;;  %v2924_v0 = vsub.f32 %v2773_v14, %v347_v19 }
  0x7d   : > { %1835 = vmatprep.mubr.f32.mxu0 %v411_v8  ;;  %1949 = vmatprep.mubr.f32.mxu1 %v411_v8  ;;  %v2067_v1 = vpack.c.bf16 %v453_v35, %v446_v11  ;;  %v1039_v12 = vand.u32 4294901760, %v2914_v39  ;;  %v2931_v16 = vsub.f32 %v2779_v18, %v350_v24  ;;  %v2936_v13 = vsub.f32 %v2782_v20, %v942_v25 }
  0x7e   : > { %2062 = vmatpush3.bf16.msra.mxu0 %v2837_v41  ;;  %2158 = vmatpush3.bf16.msra.mxu1 %v2847_v44  ;;  %v1046_v14 = vand.u32 4294901760, %v2919_v61  ;;  %v458_v17 = vand.u32 4294901760, %v2924_v0  ;;  %v2944_v19 = vsub.f32 %v2784_v21, %v945_v30  ;;  %v2949_v18 = vsub.f32 %v2792_v26, %v353_v31 }
  0x7f   : > { %2064 = vmatprep.subr.bf16.mxu0 %v2063_v34  ;;  %2160 = vmatprep.subr.bf16.mxu1 %v2159_v42  ;;  %v1040_v20 = vsub.f32 %v2914_v39, %v1039_v12  ;;  %v465_v24 = vand.u32 4294901760, %v2931_v16  ;;  %v1053_v25 = vand.u32 4294901760, %v2936_v13  ;;  %v2959_v2 = vsub.f32 %v2794_v27, %v356_v32 }
  0x80   : > { %v1047_v21 = vsub.f32 %v2919_v61, %v1046_v14  ;;  %v459_v26 = vsub.f32 %v2924_v0, %v458_v17  ;;  %v1060_v30 = vand.u32 4294901760, %v2944_v19  ;;  %v472_v31 = vand.u32 4294901760, %v2949_v18 }
  0x81   : > { %1836 = vmatmul.mubr.f32.vlgmr.msra.gmra.mrb[0].mxu0 %v421_v60  ;;  %1950 = vmatmul.mubr.f32.vlgmr.msra.gmra.mrb[0].mxu1 %v421_v60  ;;  %v1041_v3 = vand.u32 4294901760, %v1040_v20  ;;  %v466_v27 = vsub.f32 %v2931_v16, %v465_v24  ;;  %v1054_v32 = vsub.f32 %v2936_v13, %v1053_v25  ;;  %v479_v4 = vand.u32 4294901760, %v2959_v2 }
  0x82   : > { %2066 = vmatpush3.bf16.msra.mxu0 %v2063_v34  ;;  %2162 = vmatpush3.bf16.msra.mxu1 %v2159_v42  ;;  %v1048_v5 = vand.u32 4294901760, %v1047_v21  ;;  %v460_v6 = vand.u32 4294901760, %v459_v26  ;;  %v1061_v7 = vsub.f32 %v2944_v19, %v1060_v30  ;;  %v473_v8 = vsub.f32 %v2949_v18, %v472_v31 }
  0x83   : > { %2068 = vmatprep.subr.bf16.mxu0 %v2067_v1  ;;  %v467_v9 = vand.u32 4294901760, %v466_v27  ;;  %v1055_v10 = vand.u32 4294901760, %v1054_v32  ;;  %v480_v11 = vsub.f32 %v2959_v2, %v479_v4  ;;  %v2988_v34 = vsub.f32 %v2796_v28, %v948_v37  ;;  %1854 = vmatprep.mubr.f32.mxu0 %v2840_v43 }
  0x84   : > { %1968 = vmatprep.mubr.f32.mxu1 %v2840_v43  ;;  %v2163_v35 = vpack.c.bf16 %v1048_v5, %v1041_v3  ;;  %v1062_v42 = vand.u32 4294901760, %v1061_v7  ;;  %v474_v60 = vand.u32 4294901760, %v473_v8  ;;  %v2995_v20 = vsub.f32 %v2808_v33, %v951_v38 }
  0x85   : > { %v2071_v21 = vpack.c.bf16 %v467_v9, %v460_v6  ;;  %v481_v26 = vand.u32 4294901760, %v480_v11  ;;  %v1067_v27 = vand.u32 4294901760, %v2988_v34  ;;  %v2079_v5 = vpack.c.bf16 %v2853_v47, %v2851_v46 }
  0x86   : > { %2070 = vmatpush3.bf16.msra.mxu0 %v2067_v1  ;;  %2164 = vmatprep.subr.bf16.mxu1 %v2163_v35  ;;  %v2167_v28 = vpack.c.bf16 %v1062_v42, %v1055_v10  ;;  %v1074_v37 = vand.u32 4294901760, %v2995_v20  ;;  %v2175_v7 = vpack.c.bf16 %v2860_v50, %v2858_v49  ;;  %v2083_v8 = vpack.c.bf16 %v2870_v55, %v2862_v51 }
  0x87   : > { %2166 = vmatpush3.bf16.msra.mxu1 %v2163_v35  ;;  %2072 = vmatprep.subr.bf16.mxu0 %v2071_v21  ;;  %v2075_v32 = vpack.c.bf16 %v481_v26, %v474_v60  ;;  %v1068_v3 = vsub.f32 %v2988_v34, %v1067_v27  ;;  %v2179_v9 = vpack.c.bf16 %v2919_v61, %v2914_v39 }
  0x88   : > { %2168 = vmatprep.subr.bf16.mxu1 %v2167_v28  ;;  %v1075_v33 = vsub.f32 %v2995_v20, %v1074_v37  ;;  %v2087_v10 = vpack.c.bf16 %v2931_v16, %v2924_v0  ;;  %v2183_v11 = vpack.c.bf16 %v2944_v19, %v2936_v13  ;;  %v2091_v35 = vpack.c.bf16 %v2959_v2, %v2949_v18 }
  0x89   : > { %v1069_v38 = vand.u32 4294901760, %v1068_v3  ;;  %v2187_v42 = vpack.c.bf16 %v2995_v20, %v2988_v34  ;;  %v2115_v46 = vpack.c.bf16 %v451_v63, %v444_v59  ;;  %v2211_v47 = vpack.c.bf16 %v1046_v14, %v1039_v12 }
  0x8a   : > { %2074 = vmatpush3.bf16.msra.mxu0 %v2071_v21  ;;  %v1076_v1 = vand.u32 4294901760, %v1075_v33  ;;  %v2119_v49 = vpack.c.bf16 %v465_v24, %v458_v17  ;;  %v2215_v50 = vpack.c.bf16 %v1060_v30, %v1053_v25  ;;  %v2123_v51 = vpack.c.bf16 %v479_v4, %v472_v31 }
  0x8b   : > { %2076 = vmatprep.subr.bf16.mxu0 %v2075_v32  ;;  %2170 = vmatpush3.bf16.msra.mxu1 %v2167_v28 }
  0x8c   : > { %v2171_v6 = vpack.c.bf16 %v1076_v1, %v1069_v38 }
  0x8e   : > { %2078 = vmatpush3.bf16.msra.mxu0 %v2075_v32  ;;  %2172 = vmatprep.subr.bf16.mxu1 %v2171_v6 }
  0x8f   : > { %2080 = vmatprep.subr.bf16.mxu0 %v2079_v5  ;;  %2174 = vmatpush3.bf16.msra.mxu1 %v2171_v6 }
  0x90   : > { %2176 = vmatprep.subr.bf16.mxu1 %v2175_v7 }
  0x91   : > { %1855 = vmatmul.mubr.f32.vlgmr.msra.gmra.mrb[0].mxu0 %v2849_v45 }
  0x92   : > { %2082 = vmatpush3.bf16.msra.mxu0 %v2079_v5  ;;  %1873 = vmatprep.mubr.f32.mxu0 %v2856_v48 }
  0x93   : > { %1969 = vmatmul.mubr.f32.vlgmr.msra.gmra.mrb[0].mxu1 %v2849_v45  ;;  %2084 = vmatprep.subr.bf16.mxu0 %v2083_v8 }
  0x94   : > { %2178 = vmatpush3.bf16.msra.mxu1 %v2175_v7  ;;  %1987 = vmatprep.mubr.f32.mxu1 %v2856_v48  ;;  %v2111_v48 = vpack.c.bf16 %v437_v53, %v430_v52  ;;  %v2219_v52 = vpack.c.bf16 %v1074_v37, %v1067_v27 }
  0x95   : > { %2180 = vmatprep.subr.bf16.mxu1 %v2179_v9 }
  0x96   : > { %2086 = vmatpush3.bf16.msra.mxu0 %v2083_v8 }
  0x97   : > { %2088 = vmatprep.subr.bf16.mxu0 %v2087_v10 }
  0x98   : > { %2182 = vmatpush3.bf16.msra.mxu1 %v2179_v9 }
  0x99   : > { %2184 = vmatprep.subr.bf16.mxu1 %v2183_v11 }
  0x9a   : > { %2090 = vmatpush3.bf16.msra.mxu0 %v2087_v10 }
  0x9b   : > { %2092 = vmatprep.subr.bf16.mxu0 %v2091_v35 }
  0x9c   : > { %2186 = vmatpush3.bf16.msra.mxu1 %v2183_v11 }
  0x9d   : > { %2188 = vmatprep.subr.bf16.mxu1 %v2187_v42 }
  0x9e   : > { %2094 = vmatpush3.bf16.msra.mxu0 %v2091_v35 }
  0x9f   : > { %2096 = vmatprep.subr.bf16.mxu0 %v2775_v15 }
  0xa0   : > { %2190 = vmatpush3.bf16.msra.mxu1 %v2187_v42 }
  0xa1   : > { %2192 = vmatprep.subr.bf16.mxu1 %v2786_v22  ;;  %1874 = vmatmul.mubr.f32.vlgmr.msra.gmra.mrb[0].mxu0 %v2868_v54 }
  0xa2   : > { %2098 = vmatpush3.bf16.msra.mxu0 %v2775_v15  ;;  %1892 = vmatprep.mubr.f32.mxu0 %v2875_v56 }
  0xa3   : > { %1988 = vmatmul.mubr.f32.vlgmr.msra.gmra.mrb[0].mxu1 %v2868_v54  ;;  %2100 = vmatprep.subr.bf16.mxu0 %v2788_v23  ;;  %v2207_v54 = vpack.c.bf16 %v1032_v58, %v1025_v57 }
  0xa4   : > { %2194 = vmatpush3.bf16.msra.mxu1 %v2786_v22  ;;  %2006 = vmatprep.mubr.f32.mxu1 %v2875_v56 }
  0xa5   : > { %2196 = vmatprep.subr.bf16.mxu1 %v2803_v29 }
  0xa6   : > { %2102 = vmatpush3.bf16.msra.mxu0 %v2788_v23 }
  0xa7   : > { %2104 = vmatprep.subr.bf16.mxu0 %v2820_v36 }
  0xa8   : > { %2198 = vmatpush3.bf16.msra.mxu1 %v2803_v29 }
  0xa9   : > { %2200 = vmatprep.subr.bf16.mxu1 %v2831_v40 }
  0xaa   : > { %2106 = vmatpush3.bf16.msra.mxu0 %v2820_v36 }
  0xab   : > { %2108 = vmatprep.subr.bf16.mxu0 %v2837_v41 }
  0xac   : > { %2202 = vmatpush3.bf16.msra.mxu1 %v2831_v40 }
  0xad   : > { %2204 = vmatprep.subr.bf16.mxu1 %v2847_v44 }
  0xae   : > { %2110 = vmatpush3.bf16.msra.mxu0 %v2837_v41 }
  0xaf   : > { %2112 = vmatprep.subr.bf16.mxu0 %v2111_v48 }
  0xb0   : > { %2206 = vmatpush3.bf16.msra.mxu1 %v2847_v44 }
  0xb1   : > { %2208 = vmatprep.subr.bf16.mxu1 %v2207_v54  ;;  %1893 = vmatmul.mubr.f32.vlgmr.msra.gmra.mrb[0].mxu0 %v2888_v62 }
  0xb2   : > { %2114 = vmatpush3.bf16.msra.mxu0 %v2111_v48  ;;  %1911 = vmatprep.mubr.f32.mxu0 %v2840_v43 }
  0xb3   : > { %2007 = vmatmul.mubr.f32.vlgmr.msra.gmra.mrb[0].mxu1 %v2888_v62  ;;  %2116 = vmatprep.subr.bf16.mxu0 %v2115_v46 }
  0xb4   : > { %2210 = vmatpush3.bf16.msra.mxu1 %v2207_v54  ;;  %2025 = vmatprep.mubr.f32.mxu1 %v2840_v43 }
  0xb5   : > { %2212 = vmatprep.subr.bf16.mxu1 %v2211_v47 }
  0xb6   : > { %2118 = vmatpush3.bf16.msra.mxu0 %v2115_v46 }
  0xb7   : > { %2120 = vmatprep.subr.bf16.mxu0 %v2119_v49 }
  0xb8   : > { %2214 = vmatpush3.bf16.msra.mxu1 %v2211_v47 }
  0xb9   : > { %2216 = vmatprep.subr.bf16.mxu1 %v2215_v50 }
  0xba   : > { %2122 = vmatpush3.bf16.msra.mxu0 %v2119_v49 }
  0xbb   : > { %2124 = vmatprep.subr.bf16.mxu0 %v2123_v51 }
  0xbc   : > { %2218 = vmatpush3.bf16.msra.mxu1 %v2215_v50 }
  0xbd   : > { %2220 = vmatprep.subr.bf16.mxu1 %v2219_v52 }
  0xbe   : > { %2126 = vmatpush3.bf16.msra.mxu0 %v2123_v51 }
  0xbf   : > { %2128 = vmatprep.subr.bf16.mxu0 %v2775_v15 }
  0xc0   : > { %2222 = vmatpush3.bf16.msra.mxu1 %v2219_v52 }
  0xc1   : > { %2224 = vmatprep.subr.bf16.mxu1 %v2786_v22  ;;  %1912 = vmatmul.mubr.f32.vlgmr.msra.gmra.mrb[0].mxu0 %v2849_v45 }
  0xc2   : > { %2130 = vmatpush3.bf16.msra.mxu0 %v2775_v15  ;;  %1930 = vmatprep.mubr.f32.mxu0 %v2840_v43  ;;  %v1686_v15 = vld [vmem:[%s3205_s2] ss:$0 sm:$0xff] }
  0xc3   : > { %2026 = vmatmul.mubr.f32.vlgmr.msra.gmra.mrb[0].mxu1 %v2849_v45  ;;  %2132 = vmatprep.subr.bf16.mxu0 %v2788_v23 }
  0xc4   : > { %2226 = vmatpush3.bf16.msra.mxu1 %v2786_v22  ;;  %2044 = vmatprep.mubr.f32.mxu1 %v2840_v43 }
  0xc5   : > { %2228 = vmatprep.subr.bf16.mxu1 %v2803_v29 }
  0xc6   : > { %2134 = vmatpush3.bf16.msra.mxu0 %v2788_v23  ;;  %v1687_v23 = vld [vmem:[%s3207_s4] ss:$0 sm:$0xff] }
  0xc7   : > { %2136 = vmatprep.subr.bf16.mxu0 %v2820_v36 }
  0xc8   : > { %2230 = vmatpush3.bf16.msra.mxu1 %v2803_v29 }
  0xc9   : > { %2232 = vmatprep.subr.bf16.mxu1 %v2831_v40 }
  0xca   : > { %2138 = vmatpush3.bf16.msra.mxu0 %v2820_v36 }
  0xcb   : > { %2140 = vmatprep.subr.bf16.mxu0 %v2837_v41 }
  0xcc   : > { %2234 = vmatpush3.bf16.msra.mxu1 %v2831_v40 }
  0xcd   : > { %2236 = vmatprep.subr.bf16.mxu1 %v2847_v44 }
  0xce   : > { %2142 = vmatpush3.bf16.msra.mxu0 %v2837_v41 }
  0xd0   : > { %2238 = vmatpush3.bf16.msra.mxu1 %v2847_v44 }
  0xd1   : > { %1931 = vmatmul.mubr.f32.vlgmr.msra.gmra.mrb[0].mxu0 %v2849_v45 }
  0xd3   : > { %2045 = vmatmul.mubr.f32.vlgmr.msra.gmra.mrb[0].mxu1 %v2849_v45 }
 0x1a4   : > { %v1932_v22 = vpop.f32.mrb[0].mxu0 }
 0x1a5   : > { %v2239_v29 = vadd.f32 %v1932_v22, %v1686_v15  ;;  %v904_v36 = vpop.f32.mrb[1].mxu0 }
 0x1a6   : > { %v2046_v40 = vpop.f32.mrb[0].mxu1  ;;  %v2240_v41 = vadd.f32 %v1686_v15, %v904_v36 }
 0x1a7   : > { %1510 = vst [vmem:[%s302_s27 + $0x8] sm:$0xff] %v2239_v29  ;;  %v2241_v43 = vadd.f32 %v2046_v40, %v1687_v23  ;;  %v1499_v44 = vpop.f32.mrb[1].mxu1 }
 0x1a8   : > { %1509 = vst [vmem:[%s302_s27] sm:$0xff] %v2240_v41  ;;  %v2242_v45 = vadd.f32 %v1687_v23, %v1499_v44 }
 0x1a9   : > { %1512 = vst [vmem:[%s3114_s12 + $0x8] sm:$0xff] %v2241_v43 }
 0x1aa   : > { %2438 = shalt.err (!%p2435_p1)
}
 0x1ab   : > { %s2439_s27 = scalar_lea.hbm %s3120_s15, 256  ;;  %s2443_s14 = scalar_lea.hbm %s3208_s5, 512 }
 0x1ac   : > { %p2440_p13 = scmp.ne.s32.totalorder %s3120_s15, %s2439_s27  ;;  %p2444_p4 = scmp.lt.u32.totalorder %s3120_s15, %s3208_s5 }
 0x1ad   : > { %p2445_p5 = scmp.lt.u32.totalorder %s2443_s14, %s2439_s27  ;;  %p2447_p11 = scmp.lt.u32.totalorder %s2439_s27, %s3120_s15 }
 0x1ae   : > { %p2441_p6 = pnand %p2440_p13, %p3223_p0 }
 0x1af   : > { %p2446_p8 = por %p2445_p5, %p2444_p4 }
 0x1b0   : > { %p2442_p10 = pneg %p2441_p6 }
 0x1b1   : > { %p2448_p2 = por %p2447_p11, %p2446_p8 }
 0x1b3   : > { %p2449_p3 = pnand %p2448_p2, %p2442_p10 }
 0x1b5   : > { %2452 = shalt.err (!%p2449_p3)
}
 0x1b6   : > { %s2535_s20 = smov 128   ;;  %s2536_s26 = smov 8   ;;  %1511 = vst [vmem:[%s3114_s12] sm:$0xff] %v2242_v45 }
 0x1b7   : > { %2273 = dma.vmem_to_hbm [thread:$0]  (%p3223_p0), %s3108_s29, 256, %s3120_s15, %s1514_s19, %s2535_s20, %s2535_s20, %s2536_s26  }
 0x1b8   : > { %s1519_s10 = scalar_lea.sflag [#allocation10], %s2754_s30  ;;  %s2453_s27 = scalar_lea.vmem %s3122_s13, 256 }
 0x1b9   : > { %p2454_p7 = scmp.ne.s32.totalorder %s3122_s13, %s2453_s27  ;;  %s2537_s16 = smov [#allocation9]  }
 0x1ba   : > { %s2457_s25 = sshll.u32 %s2537_s16, 4  ;;  %s2458_s25 = int_to_ptr.vmem [resolvable:$false] %s2457_s25 }
 0x1bb   : > { %p2455_p9 = pnand %p2454_p7, %p3223_p0  ;;  %s2459_s14 = scalar_lea.vmem %s2458_s25, 512 }
 0x1bc   : > { %p2460_p1 = scmp.lt.s32.totalorder %s3122_s13, %s2458_s25  ;;  %p2461_p13 = scmp.lt.s32.totalorder %s2459_s14, %s2453_s27 }
 0x1bd   : > { %p2456_p12 = pneg %p2455_p9 }
 0x1be   : > { %p2462_p6 = por %p2461_p13, %p2460_p1 }
 0x1c0   : > { %p2463_p10 = pnand %p2462_p6, %p2456_p12 }
 0x1c2   : > { %2466 = shalt.err (!%p2463_p10)
}
 0x1c3   : > { %s2467_s29 = scalar_lea.hbm %s3127_s7, 256  ;;  %s2471_s19 = scalar_lea.hbm %s3209_s6, 512 }
 0x1c4   : > { %p2468_p4 = scmp.ne.s32.totalorder %s3127_s7, %s2467_s29  ;;  %p2472_p11 = scmp.lt.u32.totalorder %s3127_s7, %s3209_s6 }
 0x1c5   : > { %p2473_p2 = scmp.lt.u32.totalorder %s2471_s19, %s2467_s29  ;;  %p2475_p7 = scmp.lt.u32.totalorder %s2467_s29, %s3127_s7 }
 0x1c6   : > { %p2469_p5 = pnand %p2468_p4, %p3223_p0 }
 0x1c7   : > { %p2474_p3 = por %p2473_p2, %p2472_p11 }
 0x1c8   : > { %p2470_p8 = pneg %p2469_p5 }
 0x1c9   : > { %p2476_p9 = por %p2475_p7, %p2474_p3 }
 0x1cb   : > { %p2477_p12 = pnand %p2476_p9, %p2470_p8 }
 0x1cd   : > { %2480 = shalt.err (!%p2477_p12)
}
 0x1ce   : > { %2274 = dma.vmem_to_hbm [thread:$0]  (%p3223_p0), %s3122_s13, 256, %s3127_s7, %s1519_s10, %s2535_s20, %s2535_s20, %s2536_s26  }
 0x1cf PF: > { %s1563_s27 = sand.u32 1, %s2515_s21   ;;  %p3224_p1 = scmp.ne.s32.totalorder %s3214_s28, 0 }
 0x1d0   : > { %p3225_p13 = scmp.ge.s32.totalorder %s2527_s24, 2  ;;  %s1564_s16 = scalar_lea.sflag [#allocation4], %s1563_s27 }
 0x1d2   : > { %p2289_p6 = pnand %p3225_p13, %p3224_p1 }
 0x1d4   : > { %2506 = dma.done.wait (!%p2289_p6), %s1564_s16, 256  }
 0x1d5   : > { %2508 = vsyncadd (!%p2289_p6), %s1564_s16, 4294967040  ;;  %s1573_s9 = scalar_lea.sflag [#allocation10], %s1563_s27 }
 0x1d6   : > { %2510 = dma.done.wait (!%p2289_p6), %s1573_s9, 256  }
 0x1d7   : > { %2512 = vsyncadd (!%p2289_p6), %s1573_s9, 4294967040  ;;  %p24_p0 = scmp.ge.s32.totalorder %s2689_s8, 4   ;;  %s3226_s21 = smov %s2519_s22 }
 0x1d8   : > { %s3227_s22 = smov %s2523_s23  ;;  %s3228_s23 = smov %s2705_s11 }
 0x1d9   : > { %s3229_s24 = smov %s2689_s8  ;;  %26 = sbr.rel (!%p24_p0) target bundleno = 8 (0x8), region = 110 }
 0x1e0   :  { %1578 = vsyncpa [#allocation3], 1 }
 0x1e1   :  { %1580 = vsyncpa [#allocation3 + $0x1], 1 }
 0x1e2   :  { %1581 = vsyncpa [#allocation6], 1 }
 0x1e3   :  { %1582 = vsyncpa [#allocation4], 1 }
 0x1e4   :  { %1584 = vsyncpa [#allocation4 + $0x1], 1 }
 0x1e5   :  { %1585 = vsyncpa [#allocation10], 1 }
 0x1e6   :  { %1587 = vsyncpa [#allocation10 + $0x1], 1 }

</bundles_post_ra>
